<compile_context>
chip_gen: v7x
topology: tpu7x:2x2x1
jax: 0.10.0
libtpu: 0.0.40
codegen_flags: <defaults>
</compile_context>

<pallas_src>
import jax
import jax.numpy as jnp
from jax.experimental import pallas as pl
from jax.experimental.pallas import tpu as pltpu


def _split_dma_kernel(x_hbm, lo_hbm, hi_hbm, sem):
    # x_hbm:  (N, C*H*W)        in HBM (memory_space=pl.ANY)
    # lo_hbm: (N, center*H*W)   in HBM
    # hi_hbm: (N, rest*H*W)     in HBM
    lo_elems = lo_hbm.shape[1]
    hi_elems = hi_hbm.shape[1]
    cp_lo = pltpu.make_async_copy(
        x_hbm.at[:, pl.ds(0, lo_elems)], lo_hbm, sem.at[0])
    cp_hi = pltpu.make_async_copy(
        x_hbm.at[:, pl.ds(lo_elems, hi_elems)], hi_hbm, sem.at[1])
    # Issue both copies first so the DMA engines overlap; the core only waits.
    cp_lo.start()
    cp_hi.start()
    cp_lo.wait()
    cp_hi.wait()


def split(x: jax.Array):
    """Pallas equivalent of Split.forward: returns (x[:, :C//2], x[:, C//2:])."""
    N, C, H, W = x.shape
    center = C // 2
    rest = C - center
    if center == 0:
        # Degenerate split (C < 2): `lo` is empty, `hi` is the whole input.
        return x[:, :0, :, :], x

    hw = H * W
    # Flatten (C, H, W) -> C*H*W: free (metadata-only) reshape on contiguous
    # NCHW.  Each output half is then a single contiguous run per batch row,
    # so each DMA is a rank-2 strided copy with a maximal inner extent.
    x_flat = x.reshape(N, C * hw)

    lo_flat, hi_flat = pl.pallas_call(
        _split_dma_kernel,
        out_shape=(
            jax.ShapeDtypeStruct((N, center * hw), x.dtype),
            jax.ShapeDtypeStruct((N, rest * hw), x.dtype),
        ),
        in_specs=[pl.BlockSpec(memory_space=pl.ANY)],
        out_specs=(
            pl.BlockSpec(memory_space=pl.ANY),
            pl.BlockSpec(memory_space=pl.ANY),
        ),
        scratch_shapes=[pltpu.SemaphoreType.DMA((2,))],
    )(x_flat)

    return (lo_flat.reshape(N, center, H, W),
            hi_flat.reshape(N, rest, H, W))


if __name__ == "__main__":
    key = jax.random.PRNGKey(0)
    x = jax.random.normal(key, (2, 4, 16, 16), dtype=jnp.float32)

    lo, hi = split(x)
    jax.block_until_ready((lo, hi))

    # Sanity check against plain-JAX reference semantics.
    center = x.shape[1] // 2
    assert lo.shape == (2, center, 16, 16)
    assert hi.shape == (2, x.shape[1] - center, 16, 16)
    assert jnp.array_equal(lo, x[:, :center, :, :])
    assert jnp.array_equal(hi, x[:, center:, :, :])

    # Odd channel count: hi gets the extra channel.
    x_odd = jax.random.normal(key, (2, 5, 8, 8), dtype=jnp.float32)
    lo_o, hi_o = split(x_odd)
    jax.block_until_ready((lo_o, hi_o))
    assert jnp.array_equal(lo_o, x_odd[:, :2, :, :])
    assert jnp.array_equal(hi_o, x_odd[:, 2:, :, :])

    print("KERNEL_OK")
</pallas_src>

<mosaic_0001>
module attributes {stable_mosaic.version = 11 : i64} {
  func.func @_split_dma_kernel(%arg0: memref<2x1024xf32, #tpu.memory_space<any>>, %arg1: memref<2x512xf32, #tpu.memory_space<any>>, %arg2: memref<2x512xf32, #tpu.memory_space<any>>, %arg3: memref<2x!tpu.dma_semaphore, #tpu.memory_space<semaphore_mem>>) attributes {dimension_semantics = [], scalar_prefetch = 0 : i64, scratch_operands = 1 : i64, tpu.core_type = #tpu.core_type<tc>} {
    %c0_i32 = arith.constant 0 : i32
    %c0_i32_0 = arith.constant 0 : i32
    %c0_i32_1 = arith.constant 0 : i32
    %0 = tpu.memref_slice %arg0[%c0_i32_0, %c0_i32_1] : memref<2x1024xf32, #tpu.memory_space<any>> -> memref<2x512xf32, #tpu.memory_space<any>>
    %1 = tpu.memref_slice %arg3[%c0_i32] : memref<2x!tpu.dma_semaphore, #tpu.memory_space<semaphore_mem>> -> memref<1x!tpu.dma_semaphore, #tpu.memory_space<semaphore_mem>>
    %2 = tpu.memref_squeeze %1 : memref<1x!tpu.dma_semaphore, #tpu.memory_space<semaphore_mem>> -> memref<!tpu.dma_semaphore, #tpu.memory_space<semaphore_mem>>
    tpu.enqueue_dma source(%0 : memref<2x512xf32, #tpu.memory_space<any>>) target(%arg1 : memref<2x512xf32, #tpu.memory_space<any>>) target_semaphore(%2 : memref<!tpu.dma_semaphore, #tpu.memory_space<semaphore_mem>>)
    %c1_i32 = arith.constant 1 : i32
    %c0_i32_2 = arith.constant 0 : i32
    %c512_i32 = arith.constant 512 : i32
    %3 = tpu.memref_slice %arg0[%c0_i32_2, %c512_i32] : memref<2x1024xf32, #tpu.memory_space<any>> -> memref<2x512xf32, #tpu.memory_space<any>>
    %4 = tpu.memref_slice %arg3[%c1_i32] : memref<2x!tpu.dma_semaphore, #tpu.memory_space<semaphore_mem>> -> memref<1x!tpu.dma_semaphore, #tpu.memory_space<semaphore_mem>>
    %5 = tpu.memref_squeeze %4 : memref<1x!tpu.dma_semaphore, #tpu.memory_space<semaphore_mem>> -> memref<!tpu.dma_semaphore, #tpu.memory_space<semaphore_mem>>
    tpu.enqueue_dma source(%3 : memref<2x512xf32, #tpu.memory_space<any>>) target(%arg2 : memref<2x512xf32, #tpu.memory_space<any>>) target_semaphore(%5 : memref<!tpu.dma_semaphore, #tpu.memory_space<semaphore_mem>>)
    %c0_i32_3 = arith.constant 0 : i32
    %c0_i32_4 = arith.constant 0 : i32
    %c0_i32_5 = arith.constant 0 : i32
    %6 = tpu.memref_slice %arg0[%c0_i32_4, %c0_i32_5] : memref<2x1024xf32, #tpu.memory_space<any>> -> memref<2x512xf32, #tpu.memory_space<any>>
    %7 = tpu.memref_slice %arg3[%c0_i32_3] : memref<2x!tpu.dma_semaphore, #tpu.memory_space<semaphore_mem>> -> memref<1x!tpu.dma_semaphore, #tpu.memory_space<semaphore_mem>>
    %8 = tpu.memref_squeeze %7 : memref<1x!tpu.dma_semaphore, #tpu.memory_space<semaphore_mem>> -> memref<!tpu.dma_semaphore, #tpu.memory_space<semaphore_mem>>
    tpu.wait_dma2 semaphore(%8 : memref<!tpu.dma_semaphore, #tpu.memory_space<semaphore_mem>>) src(%6 : memref<2x512xf32, #tpu.memory_space<any>>) dst(%arg1 : memref<2x512xf32, #tpu.memory_space<any>>)
    %c1_i32_6 = arith.constant 1 : i32
    %c0_i32_7 = arith.constant 0 : i32
    %c512_i32_8 = arith.constant 512 : i32
    %9 = tpu.memref_slice %arg0[%c0_i32_7, %c512_i32_8] : memref<2x1024xf32, #tpu.memory_space<any>> -> memref<2x512xf32, #tpu.memory_space<any>>
    %10 = tpu.memref_slice %arg3[%c1_i32_6] : memref<2x!tpu.dma_semaphore, #tpu.memory_space<semaphore_mem>> -> memref<1x!tpu.dma_semaphore, #tpu.memory_space<semaphore_mem>>
    %11 = tpu.memref_squeeze %10 : memref<1x!tpu.dma_semaphore, #tpu.memory_space<semaphore_mem>> -> memref<!tpu.dma_semaphore, #tpu.memory_space<semaphore_mem>>
    tpu.wait_dma2 semaphore(%11 : memref<!tpu.dma_semaphore, #tpu.memory_space<semaphore_mem>>) src(%9 : memref<2x512xf32, #tpu.memory_space<any>>) dst(%arg2 : memref<2x512xf32, #tpu.memory_space<any>>)
    return
  }
}

</mosaic_0001>

<bundles_post_ra>
// kernel: tpu_custom_call.1
= control target key start
LH: loop header
LB: loop body
LE: loop exit
PB: predicated region body
PF: predicated region fallthrough
CT: control target
= control target key end

     0   :  { %s66_s12 = smov [#allocation2]   ;;  %s67_s13 = smov [#allocation3]   ;;  %s98_s0 = inlined_call_operand.hbm [shape: f32[2,1024], index: 0, kind: input, shape index: {}]   ;;  %s99_s1 = inlined_call_operand.hbm [shape: f32[2,512], index: 1, kind: output, shape index: {0}]   ;;  %s100_s2 = inlined_call_operand.hbm [shape: f32[2,512], index: 2, kind: output, shape index: {1}]  }
   0x1   :  { %s21_s11 = scalar_lea.hbm %s98_s0, 128  ;;  %s68_s14 = smov 0  }
   0x2   :  { %20 = dma.general %s98_s0, 128, %s99_s1, %s66_s12, %s67_s13, [#allocation4], %s68_s14, 0  }
   0x3   :  { %s69_s19 = smov [#allocation2 + $0x1]   ;;  %s70_s20 = smov [#allocation5]  }
   0x4   :  { %35 = dma.general %s21_s11, 128, %s100_s2, %s69_s19, %s70_s20, [#allocation6], %s68_s14, 0  }
   0x5   :  { %62 = dma.done.wait [#allocation2], 128 }
   0x6   :  { %63 = vsyncadd [#allocation2], 4294967168 }
   0x7   :  { %64 = dma.done.wait [#allocation2 + $0x1], 128 }
   0x8   :  { %65 = vsyncadd [#allocation2 + $0x1], 4294967168 }
   0x9   :  { %42 = vsyncmov [#allocation2] }
   0xc   :  { %s43_s23 = vpop.sfrf %42 }
   0xd   :  { %p55_p0 = scmp.ne.s32.totalorder %s43_s23, 0 }
   0xf   :  { %47 = shalt.err (%p55_p0)  }
  0x10   :  { %49 = vsyncmov [#allocation2 + $0x1] }
  0x13   :  { %s50_s24 = vpop.sfrf %49 }
  0x14   :  { %p56_p1 = scmp.ne.s32.totalorder %s50_s24, 0 }
  0x16   :  { %54 = shalt.err (%p56_p1)  }

</bundles_post_ra>
